<compile_context>
chip_gen: v7x
topology: tpu7x:2x2x1
jax: 0.10.0
libtpu: 0.0.40
codegen_flags: <defaults>
</compile_context>

<pallas_src>
import functools

import jax
import jax.numpy as jnp
from jax.experimental import pallas as pl
from jax.experimental.pallas import tpu as pltpu


def classifier_kernel(x_ref, w_ref, b_ref, o_ref, acc_ref, *, matmul_dtype):
    """One (tm, tn) output tile, accumulated over the hidden (K) grid axis."""
    k = pl.program_id(2)

    @pl.when(k == 0)
    def _init():
        acc_ref[...] = jnp.zeros_like(acc_ref)

    x = jnp.maximum(x_ref[...], 0.0)          # ReLU on the VPU (f32)
    w = w_ref[...]
    if matmul_dtype is not None:              # optional bf16 MXU operands
        x = x.astype(matmul_dtype)
        w = w.astype(matmul_dtype)
    # Canonical (tm,tk) x (tk,tn) MXU feed, f32 accumulation.
    acc_ref[...] += jnp.dot(x, w, preferred_element_type=jnp.float32)

    @pl.when(k == pl.num_programs(2) - 1)
    def _finalize():
        out = acc_ref[...] + b_ref[...].astype(jnp.float32)
        o_ref[...] = out.astype(o_ref.dtype)


def _pick_k_tile(H, cap=512):
    """Hidden-dim tile: full H if small, else a 128-multiple divisor of H."""
    if H <= cap:
        return H
    for tk in (512, 256, 128):
        if tk <= cap and H % tk == 0:
            return tk
    # TODO(synk): irregular H above the cap needs a masked K-tail; fall back
    # to the untiled contraction (correct, but VMEM grows with H again).
    return H


def classifier_forward(x, weight_t, bias2d, *, matmul_dtype=None):
    """x: [B, H]; weight_t: [H, C] (pre-transposed at init); bias2d: [1, C]."""
    B, H = x.shape
    Hw, C = weight_t.shape
    assert H == Hw and bias2d.shape == (1, C)

    # Full-array blocks when small; lane-dense 128-multiples capped at 512
    # when large (fits double-buffered in default scoped VMEM on all of
    # v5e/v6e/v7x thanks to K-tiling).
    tm = B if B <= 512 else 512
    tn = C if C <= 512 else 512
    tk = _pick_k_tile(H)

    grid = (pl.cdiv(B, tm), pl.cdiv(C, tn), pl.cdiv(H, tk))

    itemsize = x.dtype.itemsize
    cost = pl.CostEstimate(
        flops=2 * B * H * C,
        transcendentals=0,
        bytes_accessed=(B * H * itemsize
                        + H * C * weight_t.dtype.itemsize
                        + C * bias2d.dtype.itemsize
                        + B * C * itemsize),
    )

    kernel = functools.partial(classifier_kernel, matmul_dtype=matmul_dtype)

    return pl.pallas_call(
        kernel,
        out_shape=jax.ShapeDtypeStruct((B, C), x.dtype),
        grid=grid,
        in_specs=[
            pl.BlockSpec((tm, tk), lambda i, j, k: (i, k)),   # activations
            pl.BlockSpec((tk, tn), lambda i, j, k: (k, j)),   # weight [H, C]
            pl.BlockSpec((1, tn), lambda i, j, k: (0, j)),    # bias [1, C]
        ],
        out_specs=pl.BlockSpec((tm, tn), lambda i, j, k: (i, j)),
        scratch_shapes=[pltpu.VMEM((tm, tn), jnp.float32)],   # f32 accumulator
        compiler_params=pltpu.CompilerParams(
            dimension_semantics=("parallel", "parallel", "arbitrary"),
        ),
        cost_estimate=cost,
    )(x, weight_t, bias2d)


def init_classifier_params(key, hidden_size, num_class, dtype=jnp.float32):
    """nn.Linear.reset_parameters() semantics: kaiming-uniform(a=sqrt(5)) weight
    (bound = 1/sqrt(fan_in)), uniform(+-1/sqrt(fan_in)) bias.  Parameters are
    stored once in kernel-friendly layouts: weight transposed to [H, C]
    (class dim lane-dense, canonical MXU RHS), bias as [1, C].  Pass
    dtype=jnp.bfloat16 to halve the weight HBM stream on v6e/v7x."""
    kw, kb = jax.random.split(key)
    bound = (1.0 / hidden_size) ** 0.5
    # Sample in PyTorch's [C, H] layout, transpose ONCE here (init-time only).
    weight = jax.random.uniform(
        kw, (num_class, hidden_size), jnp.float32, minval=-bound, maxval=bound
    )
    weight_t = jnp.asarray(weight.T, dtype=dtype)
    bias2d = jax.random.uniform(
        kb, (1, num_class), dtype, minval=-bound, maxval=bound
    )
    return weight_t, bias2d


if __name__ == "__main__":
    batch = 8
    hidden_size = 32
    num_class = 16

    key = jax.random.PRNGKey(0)
    kx, kp = jax.random.split(key)

    x = jax.random.normal(kx, (batch, hidden_size), jnp.float32)
    weight_t, bias2d = init_classifier_params(kp, hidden_size, num_class)

    logits = classifier_forward(x, weight_t, bias2d)
    jax.block_until_ready(logits)

    # Reference in plain JAX (same semantics as the PyTorch module).
    ref = jnp.maximum(x, 0.0) @ weight_t + bias2d
    assert logits.shape == (batch, num_class)
    assert jnp.allclose(logits, ref, atol=1e-5, rtol=1e-5), "mismatch vs reference"

    print("KERNEL_OK")
</pallas_src>

<mosaic_0001>
module attributes {stable_mosaic.version = 11 : i64} {
  func.func @classifier_kernel(%arg0: i32, %arg1: i32, %arg2: i32, %arg3: memref<8x32xf32, #tpu.memory_space<vmem>>, %arg4: memref<32x16xf32, #tpu.memory_space<vmem>>, %arg5: memref<1x16xf32, #tpu.memory_space<vmem>>, %arg6: memref<8x16xf32, #tpu.memory_space<vmem>>, %arg7: memref<8x16xf32, #tpu.memory_space<vmem>>) attributes {dimension_semantics = [#tpu.dimension_semantics<parallel>, #tpu.dimension_semantics<parallel>, #tpu.dimension_semantics<arbitrary>], iteration_bounds = array<i64: 1, 1, 1>, scalar_prefetch = 0 : i64, scratch_operands = 1 : i64, tpu.core_type = #tpu.core_type<tc>, window_params = [{transform_indices = @transform_0, window_bounds = array<i64: 8, 32>}, {transform_indices = @transform_1, window_bounds = array<i64: 32, 16>}, {transform_indices = @transform_2, window_bounds = array<i64: 1, 16>}, {transform_indices = @transform_3, window_bounds = array<i64: 8, 16>}]} {
    %c0_i32 = arith.constant 0 : i32
    %0 = arith.cmpi eq, %arg2, %c0_i32 : i32
    %1 = arith.extui %0 : i1 to i32
    %c0_i32_0 = arith.constant 0 : i32
    %2 = arith.cmpi ne, %1, %c0_i32_0 : i32
    scf.if %2 {
      %cst_11 = arith.constant 0.000000e+00 : f32
      %14 = vector.broadcast %cst_11 : f32 to vector<8x16xf32>
      %c0_12 = arith.constant 0 : index
      %c0_13 = arith.constant 0 : index
      %15 = vector.load %arg7[%c0_12, %c0_13] : memref<8x16xf32, #tpu.memory_space<vmem>>, vector<8x16xf32>
      tpu.vector_store %arg7[%c0_12, %c0_13], %14 {strides = array<i32>} : memref<8x16xf32, #tpu.memory_space<vmem>>, vector<8x16xf32>,
    } else {
    }
    %c0 = arith.constant 0 : index
    %c0_1 = arith.constant 0 : index
    %3 = vector.load %arg3[%c0, %c0_1] : memref<8x32xf32, #tpu.memory_space<vmem>>, vector<8x32xf32>
    %cst = arith.constant 0.000000e+00 : f32
    %4 = vector.broadcast %cst : f32 to vector<8x32xf32>
    %5 = arith.maximumf %3, %4 : vector<8x32xf32>
    %c0_2 = arith.constant 0 : index
    %c0_3 = arith.constant 0 : index
    %6 = vector.load %arg4[%c0_2, %c0_3] : memref<32x16xf32, #tpu.memory_space<vmem>>, vector<32x16xf32>
    %c0_4 = arith.constant 0 : index
    %c0_5 = arith.constant 0 : index
    %7 = vector.load %arg7[%c0_4, %c0_5] : memref<8x16xf32, #tpu.memory_space<vmem>>, vector<8x16xf32>
    %cst_6 = arith.constant dense<0.000000e+00> : vector<8x16xf32>
    %8 = tpu.matmul %5, %6, %cst_6 {dimension_numbers = #tpu.dot_dimension_numbers<[1], [0], [0], [1], [0, 0, 1, 1], [], []>} : vector<8x32xf32>, vector<32x16xf32>, vector<8x16xf32> -> vector<8x16xf32>
    %9 = arith.addf %7, %8 : vector<8x16xf32>
    %c0_7 = arith.constant 0 : index
    %c0_8 = arith.constant 0 : index
    %10 = vector.load %arg7[%c0_7, %c0_8] : memref<8x16xf32, #tpu.memory_space<vmem>>, vector<8x16xf32>
    tpu.vector_store %arg7[%c0_7, %c0_8], %9 {strides = array<i32>} : memref<8x16xf32, #tpu.memory_space<vmem>>, vector<8x16xf32>,
    %c0_i32_9 = arith.constant 0 : i32
    %11 = arith.cmpi eq, %arg2, %c0_i32_9 : i32
    %12 = arith.extui %11 : i1 to i32
    %c0_i32_10 = arith.constant 0 : i32
    %13 = arith.cmpi ne, %12, %c0_i32_10 : i32
    scf.if %13 {
      %c0_11 = arith.constant 0 : index
      %c0_12 = arith.constant 0 : index
      %14 = vector.load %arg7[%c0_11, %c0_12] : memref<8x16xf32, #tpu.memory_space<vmem>>, vector<8x16xf32>
      %c0_13 = arith.constant 0 : index
      %c0_14 = arith.constant 0 : index
      %15 = vector.load %arg5[%c0_13, %c0_14] : memref<1x16xf32, #tpu.memory_space<vmem>>, vector<1x16xf32>
      %16 = vector.broadcast %15 : vector<1x16xf32> to vector<8x16xf32>
      %17 = arith.addf %14, %16 : vector<8x16xf32>
      %c0_15 = arith.constant 0 : index
      %c0_16 = arith.constant 0 : index
      %18 = vector.load %arg6[%c0_15, %c0_16] : memref<8x16xf32, #tpu.memory_space<vmem>>, vector<8x16xf32>
      tpu.vector_store %arg6[%c0_15, %c0_16], %17 {strides = array<i32>} : memref<8x16xf32, #tpu.memory_space<vmem>>, vector<8x16xf32>,
    } else {
    }
    return
  }
  func.func @transform_0(%arg0: i32, %arg1: i32, %arg2: i32) -> (i32, i32) {
    %c0_i32 = arith.constant 0 : i32
    return %arg0, %arg2 : i32, i32
  }
  func.func @transform_1(%arg0: i32, %arg1: i32, %arg2: i32) -> (i32, i32) {
    %c0_i32 = arith.constant 0 : i32
    return %arg2, %arg1 : i32, i32
  }
  func.func @transform_2(%arg0: i32, %arg1: i32, %arg2: i32) -> (i32, i32) {
    %c0_i32 = arith.constant 0 : i32
    %c0_i32_0 = arith.constant 0 : i32
    return %c0_i32, %arg1 : i32, i32
  }
  func.func @transform_3(%arg0: i32, %arg1: i32, %arg2: i32) -> (i32, i32) {
    %c0_i32 = arith.constant 0 : i32
    return %arg0, %arg1 : i32, i32
  }
}

</mosaic_0001>

<bundles_post_ra>
// kernel: tpu_custom_call.1
= control target key start
LH: loop header
LB: loop body
LE: loop exit
PB: predicated region body
PF: predicated region fallthrough
CT: control target
= control target key end

     0   :  { %vm19_vm0 = vcmask 130048   ;;  %v184_v3 = vmov 0.0|0.0   ;;  %v185_v6 = vmov 0.0   ;;  %s241_s0 = inlined_call_operand.vmem [shape: f32[8,32], index: 0, kind: input, shape index: {}]   ;;  %s242_s1 = inlined_call_operand.vmem [shape: f32[32,16], index: 1, kind: input, shape index: {}]   ;;  %s243_s2 = inlined_call_operand.vmem [shape: f32[1,16], index: 2, kind: input, shape index: {}]   ;;  %s244_s3 = inlined_call_operand.hbm [shape: f32[8,16], index: 3, kind: output, shape index: {}]  }
   0x1   :  { %v23_v0 = vld [vmem:[%s242_s1] sm:$0xff]  ;;  %v24_v1 = vld [vmem:[%s242_s1 + $0x8] sm:$0xff]  ;;  %v25_v2 = vld [vmem:[%s242_s1 + $0x10] sm:$0xff]  ;;  %150 = vmatprep.subr.bf16.mxu0 %v184_v3  ;;  %20 = vst.msk [vmem:[#allocation2] sm:$0xff] %vm19_vm0, %v185_v6 }
   0x2   :  { %v151_v4 = vpack.c.bf16 %v24_v1, %v23_v0  ;;  %v26_v5 = vld [vmem:[%s242_s1 + $0x18] sm:$0xff] }
   0x3   :  { %8 = vsyncpa [#allocation4], 0  ;;  %vm186_vm1 = vmmov 0   ;;  %v154_v7 = vpack.c.bf16 %v26_v5, %v25_v2  ;;  %v21_v8 = vld [vmem:[%s241_s0] sm:$0xff]  ;;  %vm28_vm2 = vcmask 261120   ;;  %s187_s23 = smov [#allocation3]  }
   0x4   :  { %147 = vmatprep.mubr.msk.f32.mxu0 %vm186_vm1, %v185_v6  ;;  %152 = vmatpush3.bf16.msra.mxu0 %v151_v4  ;;  %v22_v9 = vmax.f32 %v21_v8, 0.0  ;;  %v133_v14 = vld [vmem:[%s243_s2] ss:$0 sm:$0xff]  ;;  %s124_s24 = sshll.u32 %s187_s23, 4  ;;  %s125_s24 = int_to_ptr.vmem [resolvable:$true] %s124_s24 }
   0x5   :  { %153 = vmatprep.subr.bf16.mxu0 %v184_v3  ;;  %s160_s0 = scalar_lea.vmem %s125_s24, 128  ;;  %p165_p1 = scmp.lt.s32.totalorder %s125_s24, %s125_s24 }
   0x6   :  { %p161_p0 = scmp.ne.s32.totalorder %s125_s24, %s160_s0  ;;  %p166_p2 = scmp.lt.s32.totalorder %s160_s0, %s160_s0 }
   0x8   :  { %155 = vmatpush3.bf16.msra.mxu0 %v154_v7  ;;  %v27_v10 = vld [vmem:[#allocation2] sm:$0xff]  ;;  %p167_p3 = por %p166_p2, %p165_p1 }
   0xa   :  { %p168_p4 = pnand %p167_p3, %p161_p0 }
   0xb   :  { %148 = vmatmul.mubr.msk.f32.vlgmr.msra.gmra.mrb[0].mxu0 %vm28_vm2, %v22_v9 }
  0xde   :  { %v98_v11 = vpop.f32.mrb[0].mxu0 }
  0xdf   :  { %v102_v12 = vadd.f32 %v98_v11, %v27_v10  ;;  %v149_v13 = vpop.f32.mrb[1].mxu0 }
  0xe1   :  { %104 = vst.msk [vmem:[#allocation2] sm:$0xff] %vm19_vm0, %v102_v12 }
  0xe8   :  { %v108_v15 = vld [vmem:[#allocation2] sm:$0xff] }
  0xe9   :  { %v116_v16 = vadd.f32 %v133_v14, %v108_v15 }
  0xeb   :  { %117 = vst.msk [vmem:[#allocation3] sm:$0xff] %vm19_vm0, %v116_v16 }
  0xec   :  { %171 = shalt.err (!%p168_p4)
}
  0xed   :  { %s172_s27 = scalar_lea.hbm %s244_s3, 128 }
  0xee   :  { %p173_p5 = scmp.ne.s32.totalorder %s244_s3, %s172_s27  ;;  %p176_p6 = scmp.lt.u32.totalorder %s172_s27, %s244_s3 }
  0xf0   :  { %p178_p7 = pnand %p176_p6, %p173_p5 }
  0xf2   :  { %181 = shalt.err (!%p178_p7)
}
  0xf3   :  { %127 = dma.vmem_to_hbm [thread:$0]  %s125_s24, 128, %s244_s3, [#allocation4]  }
  0xf4   :  { %182 = dma.done.wait [#allocation4], 128  }
  0xf5   :  { %183 = vsyncadd [#allocation4], 4294967168 }
  0xf6   :  { %131 = vsyncpa [#allocation4], 1 }

</bundles_post_ra>
